<compile_context>
chip_gen: v6e
topology: v6e:2x2x1
jax: 0.10.0
libtpu: 0.0.40
codegen_flags: <defaults>
</compile_context>

<pallas_src>
import functools

import jax
import jax.numpy as jnp
from jax import lax
from jax.experimental import pallas as pl
from jax.experimental.pallas import tpu as pltpu

_NEG_INF = -1e30  # finite "minus infinity": avoids inf-inf NaNs in online LSE


def _round_up(x, m):
    return (x + m - 1) // m * m


def _simclr_lse_kernel(anchor_ref, contrast_t_ref, lse_ref, m_sc, l_sc, *,
                       inv_temp, two_b, tm, tn, has_col_pad):
    i = pl.program_id(0)
    j = pl.program_id(1)

    @pl.when(j == 0)
    def _init():
        m_sc[...] = jnp.full_like(m_sc, _NEG_INF)
        l_sc[...] = jnp.zeros_like(l_sc)

    # 1/T on the [tm, dim] anchor tile (dim << tn), then one MXU matmul:
    # [tm, dim] x [dim, tn] -> f32 [tm, tn] scaled similarity tile.
    a = anchor_ref[...] * inv_temp
    s = lax.dot_general(
        a, contrast_t_ref[...],
        dimension_numbers=(((1,), (0,)), ((), ())),
        preferred_element_type=jnp.float32,
    )

    def _lse_update(vals):
        m_prev = m_sc[...]
        m_new = jnp.maximum(m_prev, jnp.max(vals, axis=1, keepdims=True))
        alpha = jnp.exp(m_prev - m_new)
        l_sc[...] = alpha * l_sc[...] + jnp.sum(
            jnp.exp(vals - m_new), axis=1, keepdims=True)
        m_sc[...] = m_new

    row0 = i * tm
    col0 = j * tn
    # A mask is only needed when the tile's row/column ranges overlap (self
    # diagonal) or, with column padding, on the last column tile.
    needs_mask = (col0 < row0 + tm) & (row0 < col0 + tn)
    if has_col_pad:
        needs_mask = needs_mask | (j == pl.num_programs(1) - 1)

    @pl.when(needs_mask)
    def _masked():
        r = row0 + lax.broadcasted_iota(jnp.int32, (tm, tn), 0)
        c = col0 + lax.broadcasted_iota(jnp.int32, (tm, tn), 1)
        invalid = c == r                       # exclude the self pair
        if has_col_pad:
            invalid = invalid | (c >= two_b)   # exclude padded columns
        _lse_update(jnp.where(invalid, _NEG_INF, s))

    @pl.when(jnp.logical_not(needs_mask))
    def _unmasked():
        _lse_update(s)

    @pl.when(j == pl.num_programs(1) - 1)
    def _finalize():
        # per-row log-sum-exp over the non-self columns (row max cancels
        # analytically against the reference's subtracted max).
        lse_ref[...] = m_sc[...] + jnp.log(l_sc[...])


def _hw_tile_config():
    """Per-generation (tm_max, tn_max, vmem_budget_bytes, split_rows)."""
    kind = ""
    try:
        kind = jax.devices()[0].device_kind.lower()
    except Exception:
        pass
    if "v5" in kind:    # v5e: 4x128^2 MXU, lowest HBM BW -> tm=128, wide tn
        return 128, 1024, 48 * 1024 * 1024, False
    if "v6" in kind:    # v6e: 256-tall MXU, 128 MiB physical VMEM
        return 256, 1024, 64 * 1024 * 1024, False
    if "v7" in kind:    # v7x: 256-tall MXU but 64 MiB VMEM/TC, 2 TCs/chip
        return 256, 512, 48 * 1024 * 1024, True
    return 128, 512, 32 * 1024 * 1024, False


def _select_tiles(b, dim, two_b, in_bytes, tm_max, tn_max, budget, split_rows):
    tm = min(tm_max, _round_up(b, 8))
    if split_rows and b > 8 and _round_up(b, tm) == tm:
        # keep >=2 row tiles so the "parallel" axis spans both v7x TensorCores
        tm = max(8, _round_up((b + 1) // 2, 8))
    tn = min(tn_max, _round_up(two_b, 128))

    def footprint(tm_, tn_):
        # double-buffered input tiles + f32 logits/exp temporaries + scratch
        return (2 * (tm_ * dim + dim * tn_) * in_bytes
                + 3 * tm_ * tn_ * 4 + 4 * tm_ * 4)

    while footprint(tm, tn) > budget and tn > 128:
        tn = max(128, (tn // 2) // 128 * 128)
    while footprint(tm, tn) > budget and tm > 8:
        tm = max(8, (tm // 2) // 8 * 8)
    return tm, tn


def simclr_loss(features, temperature, *, compute_dtype=jnp.float32):
    """features: [b, 2, dim] -> scalar SimCLR loss (float32).

    compute_dtype is the dtype fed to the MXU (accumulation is always f32).
    jnp.bfloat16 is the native MXU path (~1e-3 rel error on the loss);
    jnp.float32 matches the reference within 1e-5.
    """
    b, n, dim = features.shape
    assert n == 2
    two_b = 2 * b
    inv_temp = 1.0 / float(temperature)
    features = features.astype(jnp.float32)

    # Positive logit per row, hoisted out of the kernel (one O(b*dim) pass):
    # dot_product[i, b + i] = <view0_i, view1_i> / T.
    pos = jnp.sum(features[:, 0, :] * features[:, 1, :], axis=-1) * inv_temp

    # Layout plumbing only: anchor [b, dim]; contrast^T [dim, 2b] where column
    # j < b is view0[j] and column j >= b is view1[j - b] (matches the
    # reference's concat(view0, view1).T).
    anchor = features[:, 0, :].astype(compute_dtype)
    contrast_t = (jnp.transpose(features, (2, 1, 0))
                  .reshape(dim, two_b).astype(compute_dtype))

    in_bytes = jnp.dtype(compute_dtype).itemsize
    tm_max, tn_max, vmem_budget, split_rows = _hw_tile_config()
    tm, tn = _select_tiles(b, dim, two_b, in_bytes, tm_max, tn_max,
                           vmem_budget, split_rows)
    b_pad = _round_up(b, tm)
    n_pad = _round_up(two_b, tn)

    if b_pad != b:
        anchor = jnp.pad(anchor, ((0, b_pad - b), (0, 0)))
    if n_pad != two_b:
        contrast_t = jnp.pad(contrast_t, ((0, 0), (0, n_pad - two_b)))

    kernel = functools.partial(
        _simclr_lse_kernel,
        inv_temp=inv_temp, two_b=two_b, tm=tm, tn=tn,
        has_col_pad=(n_pad != two_b),
    )

    grid = (b_pad // tm, n_pad // tn)
    num_row_tiles = grid[0]
    cost = pl.CostEstimate(
        flops=2 * b_pad * n_pad * dim,
        # exp over every tile element + per-step alpha exps + final log
        transcendentals=b_pad * n_pad + b_pad * (grid[1] + 1),
        # contrast_t is re-streamed from HBM once per row tile
        bytes_accessed=(in_bytes * (b_pad * dim + dim * n_pad * num_row_tiles)
                        + 4 * b_pad),
    )

    lse = pl.pallas_call(
        kernel,
        out_shape=jax.ShapeDtypeStruct((b_pad, 1), jnp.float32),
        grid_spec=pltpu.PrefetchScalarGridSpec(
            num_scalar_prefetch=0,
            grid=grid,
            in_specs=[
                pl.BlockSpec((tm, dim), lambda i, j: (i, 0)),   # anchor rows
                pl.BlockSpec((dim, tn), lambda i, j: (0, j)),   # contrast cols
            ],
            out_specs=pl.BlockSpec((tm, 1), lambda i, j: (i, 0)),
            scratch_shapes=[pltpu.VMEM((tm, 1), jnp.float32)] * 2,
        ),
        compiler_params=pltpu.CompilerParams(
            dimension_semantics=("parallel", "arbitrary"),
            vmem_limit_bytes=vmem_budget,
        ),
        cost_estimate=cost,
    )(anchor, contrast_t)

    # per-row loss = LSE over non-self columns minus the positive logit; mean
    # over the real (un-padded) rows only.
    return jnp.mean(lse[:b, 0] - pos)


def _reference_simclr_loss(features, temperature):
    """Pure-JAX reference mirroring the PyTorch module exactly."""
    b, n, dim = features.shape
    anchor = features[:, 0]
    contrast = jnp.concatenate([features[:, 0], features[:, 1]], axis=0)
    dot = (anchor @ contrast.T) / temperature
    logits = dot - jnp.max(dot, axis=1, keepdims=True)
    mask = jnp.tile(jnp.eye(b, dtype=jnp.float32), (1, 2))
    logits_mask = jnp.ones((b, 2 * b), jnp.float32).at[
        jnp.arange(b), jnp.arange(b)].set(0.0)
    mask = mask * logits_mask
    exp_logits = jnp.exp(logits) * logits_mask
    log_prob = logits - jnp.log(jnp.sum(exp_logits, axis=1, keepdims=True))
    return -jnp.mean(jnp.sum(mask * log_prob, axis=1) / jnp.sum(mask, axis=1))


if __name__ == "__main__":
    b, dim = 8, 32
    temperature = 0.5
    key = jax.random.PRNGKey(0)
    features = jax.random.normal(key, (b, 2, dim), dtype=jnp.float32)

    ref = jax.block_until_ready(_reference_simclr_loss(features, temperature))

    # f32 MXU path: preserves the module's numerics (tight check).
    loss_f32 = jax.block_until_ready(simclr_loss(features, temperature))
    assert jnp.allclose(loss_f32, ref, atol=1e-5, rtol=1e-5), (loss_f32, ref)

    # bf16 MXU path (the recommended fast path): looser check by design.
    loss_bf16 = jax.block_until_ready(
        simclr_loss(features, temperature, compute_dtype=jnp.bfloat16))
    assert jnp.allclose(loss_bf16, ref, atol=5e-2, rtol=5e-2), (loss_bf16, ref)

    print("KERNEL_OK")
</pallas_src>

<mosaic_0001>
module attributes {stable_mosaic.version = 11 : i64} {
  func.func @_simclr_lse_kernel(%arg0: i32, %arg1: i32, %arg2: memref<8x32xf32, #tpu.memory_space<vmem>>, %arg3: memref<32x128xf32, #tpu.memory_space<vmem>>, %arg4: memref<8x1xf32, #tpu.memory_space<vmem>>, %arg5: memref<8x1xf32, #tpu.memory_space<vmem>>, %arg6: memref<8x1xf32, #tpu.memory_space<vmem>>) attributes {dimension_semantics = [#tpu.dimension_semantics<parallel>, #tpu.dimension_semantics<arbitrary>], iteration_bounds = array<i64: 1, 1>, scalar_prefetch = 0 : i64, scratch_operands = 2 : i64, tpu.core_type = #tpu.core_type<tc>, window_params = [{transform_indices = @transform_0, window_bounds = array<i64: 8, 32>}, {transform_indices = @transform_1, window_bounds = array<i64: 32, 128>}, {transform_indices = @transform_2, window_bounds = array<i64: 8, 1>}]} {
    %c0_i32 = arith.constant 0 : i32
    %0 = arith.cmpi eq, %arg1, %c0_i32 : i32
    %1 = arith.extui %0 : i1 to i32
    %c0_i32_0 = arith.constant 0 : i32
    %2 = arith.cmpi ne, %1, %c0_i32_0 : i32
    scf.if %2 {
      %cst_12 = arith.constant -1.000000e+30 : f32
      %25 = vector.broadcast %cst_12 : f32 to vector<8x1xf32>
      %c0_13 = arith.constant 0 : index
      %c0_14 = arith.constant 0 : index
      %26 = vector.load %arg5[%c0_13, %c0_14] : memref<8x1xf32, #tpu.memory_space<vmem>>, vector<8x1xf32>
      tpu.vector_store %arg5[%c0_13, %c0_14], %25 {strides = array<i32>} : memref<8x1xf32, #tpu.memory_space<vmem>>, vector<8x1xf32>,
      %cst_15 = arith.constant 0.000000e+00 : f32
      %27 = vector.broadcast %cst_15 : f32 to vector<8x1xf32>
      %c0_16 = arith.constant 0 : index
      %c0_17 = arith.constant 0 : index
      %28 = vector.load %arg6[%c0_16, %c0_17] : memref<8x1xf32, #tpu.memory_space<vmem>>, vector<8x1xf32>
      tpu.vector_store %arg6[%c0_16, %c0_17], %27 {strides = array<i32>} : memref<8x1xf32, #tpu.memory_space<vmem>>, vector<8x1xf32>,
    } else {
    }
    %c0 = arith.constant 0 : index
    %c0_1 = arith.constant 0 : index
    %3 = vector.load %arg2[%c0, %c0_1] : memref<8x32xf32, #tpu.memory_space<vmem>>, vector<8x32xf32>
    %cst = arith.constant 2.000000e+00 : f32
    %4 = vector.broadcast %cst : f32 to vector<8x32xf32>
    %5 = arith.mulf %3, %4 : vector<8x32xf32>
    %c0_2 = arith.constant 0 : index
    %c0_3 = arith.constant 0 : index
    %6 = vector.load %arg3[%c0_2, %c0_3] : memref<32x128xf32, #tpu.memory_space<vmem>>, vector<32x128xf32>
    %cst_4 = arith.constant dense<0.000000e+00> : vector<8x128xf32>
    %7 = tpu.matmul %5, %6, %cst_4 {dimension_numbers = #tpu.dot_dimension_numbers<[1], [0], [0], [1], [0, 0, 1, 1], [], []>} : vector<8x32xf32>, vector<32x128xf32>, vector<8x128xf32> -> vector<8x128xf32>
    %c8_i32 = arith.constant 8 : i32
    %8 = arith.muli %arg0, %c8_i32 : i32
    %c128_i32 = arith.constant 128 : i32
    %9 = arith.muli %arg1, %c128_i32 : i32
    %c8_i32_5 = arith.constant 8 : i32
    %10 = arith.addi %8, %c8_i32_5 : i32
    %11 = arith.cmpi slt, %9, %10 : i32
    %c128_i32_6 = arith.constant 128 : i32
    %12 = arith.addi %9, %c128_i32_6 : i32
    %13 = arith.cmpi slt, %8, %12 : i32
    %14 = arith.andi %11, %13 : i1
    %c0_i32_7 = arith.constant 0 : i32
    %15 = arith.cmpi eq, %arg1, %c0_i32_7 : i32
    %16 = arith.ori %14, %15 : i1
    %17 = arith.extui %16 : i1 to i32
    %c0_i32_8 = arith.constant 0 : i32
    %18 = arith.cmpi ne, %17, %c0_i32_8 : i32
    scf.if %18 {
      %25 = tpu.iota {dimensions = array<i32: 0>} : vector<8x128xi32>
      %26 = vector.broadcast %8 : i32 to vector<8x128xi32>
      %27 = arith.addi %26, %25 : vector<8x128xi32>
      %28 = tpu.iota {dimensions = array<i32: 1>} : vector<8x128xi32>
      %29 = vector.broadcast %9 : i32 to vector<8x128xi32>
      %30 = arith.addi %29, %28 : vector<8x128xi32>
      %31 = arith.cmpi eq, %30, %27 : vector<8x128xi32>
      %c16_i32 = arith.constant 16 : i32
      %32 = vector.broadcast %c16_i32 : i32 to vector<8x128xi32>
      %33 = arith.cmpi sge, %30, %32 : vector<8x128xi32>
      %34 = arith.ori %31, %33 : vector<8x128xi1>
      %cst_12 = arith.constant -1.000000e+30 : f32
      %35 = vector.broadcast %cst_12 : f32 to vector<8x128xf32>
      %36 = arith.select %34, %35, %7 : vector<8x128xi1>, vector<8x128xf32>
      %c0_13 = arith.constant 0 : index
      %c0_14 = arith.constant 0 : index
      %37 = vector.load %arg5[%c0_13, %c0_14] : memref<8x1xf32, #tpu.memory_space<vmem>>, vector<8x1xf32>
      %cst_15 = arith.constant dense<0xFF800000> : vector<8xf32>
      %38 = vector.multi_reduction <maximumf>, %36, %cst_15 [1] : vector<8x128xf32> to vector<8xf32>
      %39 = vector.shape_cast %38 : vector<8xf32> to vector<8x1xf32>
      %40 = arith.maximumf %37, %39 : vector<8x1xf32>
      %41 = arith.subf %37, %40 : vector<8x1xf32>
      %42 = math.exp %41 : vector<8x1xf32>
      %c0_16 = arith.constant 0 : index
      %c0_17 = arith.constant 0 : index
      %43 = vector.load %arg6[%c0_16, %c0_17] : memref<8x1xf32, #tpu.memory_space<vmem>>, vector<8x1xf32>
      %44 = arith.mulf %42, %43 : vector<8x1xf32>
      %45 = vector.broadcast %40 : vector<8x1xf32> to vector<8x128xf32>
      %46 = arith.subf %36, %45 : vector<8x128xf32>
      %47 = math.exp %46 : vector<8x128xf32>
      %cst_18 = arith.constant dense<0.000000e+00> : vector<8xf32>
      %48 = vector.multi_reduction <add>, %47, %cst_18 [1] : vector<8x128xf32> to vector<8xf32>
      %49 = vector.shape_cast %48 : vector<8xf32> to vector<8x1xf32>
      %50 = arith.addf %44, %49 : vector<8x1xf32>
      %c0_19 = arith.constant 0 : index
      %c0_20 = arith.constant 0 : index
      %51 = vector.load %arg6[%c0_19, %c0_20] : memref<8x1xf32, #tpu.memory_space<vmem>>, vector<8x1xf32>
      tpu.vector_store %arg6[%c0_19, %c0_20], %50 {strides = array<i32>} : memref<8x1xf32, #tpu.memory_space<vmem>>, vector<8x1xf32>,
      %c0_21 = arith.constant 0 : index
      %c0_22 = arith.constant 0 : index
      %52 = vector.load %arg5[%c0_21, %c0_22] : memref<8x1xf32, #tpu.memory_space<vmem>>, vector<8x1xf32>
      tpu.vector_store %arg5[%c0_21, %c0_22], %40 {strides = array<i32>} : memref<8x1xf32, #tpu.memory_space<vmem>>, vector<8x1xf32>,
    } else {
    }
    %true = arith.constant true
    %19 = arith.xori %16, %true : i1
    %20 = arith.extui %19 : i1 to i32
    %c0_i32_9 = arith.constant 0 : i32
    %21 = arith.cmpi ne, %20, %c0_i32_9 : i32
    scf.if %21 {
      %c0_12 = arith.constant 0 : index
      %c0_13 = arith.constant 0 : index
      %25 = vector.load %arg5[%c0_12, %c0_13] : memref<8x1xf32, #tpu.memory_space<vmem>>, vector<8x1xf32>
      %cst_14 = arith.constant dense<0xFF800000> : vector<8xf32>
      %26 = vector.multi_reduction <maximumf>, %7, %cst_14 [1] : vector<8x128xf32> to vector<8xf32>
      %27 = vector.shape_cast %26 : vector<8xf32> to vector<8x1xf32>
      %28 = arith.maximumf %25, %27 : vector<8x1xf32>
      %29 = arith.subf %25, %28 : vector<8x1xf32>
      %30 = math.exp %29 : vector<8x1xf32>
      %c0_15 = arith.constant 0 : index
      %c0_16 = arith.constant 0 : index
      %31 = vector.load %arg6[%c0_15, %c0_16] : memref<8x1xf32, #tpu.memory_space<vmem>>, vector<8x1xf32>
      %32 = arith.mulf %30, %31 : vector<8x1xf32>
      %33 = vector.broadcast %28 : vector<8x1xf32> to vector<8x128xf32>
      %34 = arith.subf %7, %33 : vector<8x128xf32>
      %35 = math.exp %34 : vector<8x128xf32>
      %cst_17 = arith.constant dense<0.000000e+00> : vector<8xf32>
      %36 = vector.multi_reduction <add>, %35, %cst_17 [1] : vector<8x128xf32> to vector<8xf32>
      %37 = vector.shape_cast %36 : vector<8xf32> to vector<8x1xf32>
      %38 = arith.addf %32, %37 : vector<8x1xf32>
      %c0_18 = arith.constant 0 : index
      %c0_19 = arith.constant 0 : index
      %39 = vector.load %arg6[%c0_18, %c0_19] : memref<8x1xf32, #tpu.memory_space<vmem>>, vector<8x1xf32>
      tpu.vector_store %arg6[%c0_18, %c0_19], %38 {strides = array<i32>} : memref<8x1xf32, #tpu.memory_space<vmem>>, vector<8x1xf32>,
      %c0_20 = arith.constant 0 : index
      %c0_21 = arith.constant 0 : index
      %40 = vector.load %arg5[%c0_20, %c0_21] : memref<8x1xf32, #tpu.memory_space<vmem>>, vector<8x1xf32>
      tpu.vector_store %arg5[%c0_20, %c0_21], %28 {strides = array<i32>} : memref<8x1xf32, #tpu.memory_space<vmem>>, vector<8x1xf32>,
    } else {
    }
    %c0_i32_10 = arith.constant 0 : i32
    %22 = arith.cmpi eq, %arg1, %c0_i32_10 : i32
    %23 = arith.extui %22 : i1 to i32
    %c0_i32_11 = arith.constant 0 : i32
    %24 = arith.cmpi ne, %23, %c0_i32_11 : i32
    scf.if %24 {
      %c0_12 = arith.constant 0 : index
      %c0_13 = arith.constant 0 : index
      %25 = vector.load %arg5[%c0_12, %c0_13] : memref<8x1xf32, #tpu.memory_space<vmem>>, vector<8x1xf32>
      %c0_14 = arith.constant 0 : index
      %c0_15 = arith.constant 0 : index
      %26 = vector.load %arg6[%c0_14, %c0_15] : memref<8x1xf32, #tpu.memory_space<vmem>>, vector<8x1xf32>
      %27 = math.log %26 : vector<8x1xf32>
      %28 = arith.addf %25, %27 : vector<8x1xf32>
      %c0_16 = arith.constant 0 : index
      %c0_17 = arith.constant 0 : index
      %29 = vector.load %arg4[%c0_16, %c0_17] : memref<8x1xf32, #tpu.memory_space<vmem>>, vector<8x1xf32>
      tpu.vector_store %arg4[%c0_16, %c0_17], %28 {strides = array<i32>} : memref<8x1xf32, #tpu.memory_space<vmem>>, vector<8x1xf32>,
    } else {
    }
    return
  }
  func.func @transform_0(%arg0: i32, %arg1: i32) -> (i32, i32) {
    %c0_i32 = arith.constant 0 : i32
    %c0_i32_0 = arith.constant 0 : i32
    return %arg0, %c0_i32 : i32, i32
  }
  func.func @transform_1(%arg0: i32, %arg1: i32) -> (i32, i32) {
    %c0_i32 = arith.constant 0 : i32
    %c0_i32_0 = arith.constant 0 : i32
    return %c0_i32, %arg1 : i32, i32
  }
  func.func @transform_2(%arg0: i32, %arg1: i32) -> (i32, i32) {
    %c0_i32 = arith.constant 0 : i32
    %c0_i32_0 = arith.constant 0 : i32
    return %arg0, %c0_i32 : i32, i32
  }
}

</mosaic_0001>

<bundles_post_ra>
// kernel: tpu_custom_call.1
= control target key start
LH: loop header
LB: loop body
LE: loop exit
PB: predicated region body
PF: predicated region fallthrough
CT: control target
= control target key end

     0   :  { %7 = vsyncpa [#allocation5], 0  ;;  %s326_s0 = inlined_call_operand.hbm [shape: f32[8,32], index: 0, kind: input, shape index: {}]   ;;  %s327_s1 = inlined_call_operand.hbm [shape: f32[32,128], index: 1, kind: input, shape index: {}]   ;;  %s328_s2 = inlined_call_operand.vmem [shape: f32[8,1], index: 2, kind: output, shape index: {}]  }
   0x1   :  { %8 = vsyncpa [#allocation7], 0  ;;  %s289_s9 = smov [#allocation4]   ;;  %s290_s11 = smov [#allocation6]  }
   0x2   :  { %s15_s10 = sshll.u32 %s289_s9, 4  ;;  %s24_s12 = sshll.u32 %s290_s11, 4  ;;  %s16_s10 = int_to_ptr.vmem [resolvable:$true] %s15_s10  ;;  %s25_s12 = int_to_ptr.vmem [resolvable:$true] %s24_s12 }
   0x3   :  { %s253_s13 = scalar_lea.vmem %s16_s10, 128  ;;  %p258_p1 = scmp.lt.s32.totalorder %s16_s10, %s16_s10 }
   0x4   :  { %p254_p0 = scmp.ne.s32.totalorder %s16_s10, %s253_s13  ;;  %p259_p2 = scmp.lt.s32.totalorder %s253_s13, %s253_s13 }
   0x6   :  { %p260_p3 = por %p259_p2, %p258_p1 }
   0x8   :  { %p261_p4 = pnand %p260_p3, %p254_p0 }
   0xa   :  { %264 = shalt.err (!%p261_p4)
}
   0xb   :  { %18 = dma.hbm_to_vmem [thread:$0]  %s326_s0, 128, %s16_s10, [#allocation5]  }
   0xc   :  { %s273_s16 = scalar_lea.vmem %s25_s12, 512  ;;  %p278_p6 = scmp.lt.s32.totalorder %s25_s12, %s25_s12 }
   0xd   :  { %p274_p5 = scmp.ne.s32.totalorder %s25_s12, %s273_s16  ;;  %p279_p7 = scmp.lt.s32.totalorder %s273_s16, %s273_s16 }
   0xf   :  { %p280_p8 = por %p279_p7, %p278_p6 }
  0x11   :  { %p281_p9 = pnand %p280_p8, %p274_p5 }
  0x13   :  { %284 = shalt.err (!%p281_p9)
}
  0x14   :  { %s291_s17 = smov 128   ;;  %s292_s18 = smov 8  }
  0x15   :  { %30 = dma.hbm_to_vmem [thread:$0]  %s327_s1, 512, %s25_s12, [#allocation7], %s291_s17, %s291_s17, %s292_s18  }
  0x16   :  { %285 = dma.done.wait [#allocation5], 128  }
  0x17   :  { %286 = vsyncadd [#allocation5], 4294967168 }
  0x18   :  { %287 = dma.done.wait [#allocation7], 512  }
  0x19   :  { %288 = vsyncadd [#allocation7], 4294966784  ;;  %v293_v0 = vmov 0.0   ;;  %vm294_vm0 = vmmov 0   ;;  %v49_v1 = vld [vmem:[#allocation6 + $0x18] sm:$0xff]  ;;  %v48_v2 = vld [vmem:[#allocation6 + $0x10] sm:$0xff]  ;;  %v136_v8 = vlaneseq }
  0x1a   :  { %219 = vmatprep.subr.mxu0 %v293_v0  ;;  %227 = vmatprep.mubr.msk.f32.mxu0 %vm294_vm0, %v293_v0  ;;  %v44_v3 = vld [vmem:[#allocation4] sm:$0xff]  ;;  %v47_v4 = vld [vmem:[#allocation6 + $0x8] sm:$0xff]  ;;  %v46_v5 = vld [vmem:[#allocation6] sm:$0xff]  ;;  %vm50_vm1 = vcmask 261120   ;;  %vm41_vm2 = vcmask 7168   ;;  %v296_v14 = vmov 0  }
  0x1b   :  { %220 = vmatpush3.msra.mxu0 %v49_v1  ;;  %v45_v6 = vmul.f32 2.0, %v44_v3  ;;  %v295_v7 = vmov -1e+30   ;;  %43 = vst.msk [vmem:[#allocation3] sm:$0xff] %vm41_vm2, %v293_v0  ;;  %v137_v9 = vshrl.u32 %v136_v8, 7  ;;  %v141_v10 = vand.u32 127, %v136_v8  ;;  %238 = vset.pattern.permute.xlu0 %v296_v14 }
  0x1c   :  { %221 = vmatprep.subr.mxu0 %v293_v0  ;;  %42 = vst.msk [vmem:[#allocation2] sm:$0xff] %vm41_vm2, %v295_v7 }
  0x1d   :  { %222 = vmatpush3.msra.mxu0 %v48_v2  ;;  %vm144_vm3 = vcmp.eq.s32.totalorder %v141_v10, %v137_v9  ;;  %vm145_vm4 = vcmp.ge.s32.totalorder %v141_v10, 16 }
  0x1e   :  { %223 = vmatprep.subr.mxu0 %v293_v0  ;;  %vm146_vm5 = vmor %vm144_vm3, %vm145_vm4 }
  0x1f   :  { %224 = vmatpush3.msra.mxu0 %v47_v4 }
  0x20   :  { %225 = vmatprep.subr.mxu0 %v293_v0 }
  0x21   :  { %226 = vmatpush3.msra.mxu0 %v46_v5 }
  0x22   :  { %228 = vmatmul.mubr.msk.f32.vlgmr.msra.gmra.mxu0 %vm50_vm1, %v45_v6  ;;  %v155_v25 = vld [vmem:[#allocation3] sm:$0xff] }
  0x23   :  { %v148_v15 = vld [vmem:[#allocation2] sm:$0xff] }
  0xe2   :  { %v120_v11 = vpop.f32.mrf.mxu0 }
  0xe3   :  { %v147_v12 = vsel %vm146_vm5, -1e+30, %v120_v11 }
  0xe4   :  { %149 = vmax.xlane.f32.xlu0 %v147_v12  ;;  %v229_v13 = vpop.f32.mrf.mxu0 }
 0x16d   :  { %v150_v16 = vpop.xlane.xlu0 %149 }
 0x16e   :  { %v151_v17 = vmax.f32 %v148_v15, %v150_v16 }
 0x170   :  { %v152_v18 = vsub.f32 %v148_v15, %v151_v17  ;;  %170 = vst.msk [vmem:[#allocation2] sm:$0xff] %vm41_vm2, %v151_v17  ;;  %159 = vperm.xlu0 %238, %v151_v17  }
 0x172   :  { %v153_v23 = vmul.f32 1.442695, %v152_v18 }
 0x177   :  { %v200_v32 = vld [vmem:[#allocation2] sm:$0xff] }
 0x1eb   :  { %v160_v19 = vpop.permute.xlu0 %159 }
 0x1ec   :  { %v162_v20 = vsub.f32 %v147_v12, %v160_v19 }
 0x1ee   :  { %v163_v21 = vmul.f32 1.442695, %v162_v20 }
 0x1f0   :  { %239 = vpow2.f32 %v163_v21 }
 0x1f1   :  { %241 = vpow2.f32 %v153_v23 }
 0x1fd   :  { %v240_v22 = vpop.eup %239 }
 0x1fe   :  { %165 = vadd.xlane.f32.xlu1 %v240_v22  ;;  %v242_v24 = vpop.eup %241 }
 0x1ff   :  { %v156_v26 = vmul.f32 %v242_v24, %v155_v25 }
 0x287   :  { %v166_v27 = vpop.xlane.xlu1 %165 }
 0x288   :  { %v167_v28 = vadd.f32 %v166_v27, %v156_v26 }
 0x28a   :  { %169 = vst.msk [vmem:[#allocation3] sm:$0xff] %vm41_vm2, %v167_v28 }
 0x291   :  { %v201_v29 = vld [vmem:[#allocation3] sm:$0xff] }
 0x292   :  { %243 = vlog2.f32 %v201_v29 }
 0x29f   :  { %v244_v30 = vpop.eup %243 }
 0x2a0   :  { %v203_v31 = vmul.f32 0.6931472, %v244_v30 }
 0x2a2   :  { %v204_v33 = vadd.f32 %v203_v31, %v200_v32 }
 0x2a4   :  { %206 = vst.msk [vmem:[%s328_s2] sm:$0xff] %vm41_vm2, %v204_v33 }
 0x2a5   :  { %211 = vsyncpa [#allocation5], 1 }
 0x2a6   :  { %212 = vsyncpa [#allocation7], 1 }

</bundles_post_ra>
